<compile_context>
chip_gen: v5e
topology: v5e:2x2
jax: 0.10.0
libtpu: 0.0.40
codegen_flags: <defaults>
</compile_context>

<pallas_src>
import jax
import jax.numpy as jnp
from jax.experimental import pallas as pl
from jax.experimental.pallas import tpu as pltpu


def _softplus(x):
    # numerically stable softplus = log1p(exp(-|x|)) + max(x, 0)
    return jnp.log1p(jnp.exp(-jnp.abs(x))) + jnp.maximum(x, 0.0)


def _round_up(x, m):
    return (x + m - 1) // m * m


def pgbn_fwd_kernel(
    x_ref,      # [TB, TV]   f32 counts tile
    e_ref,      # [TB, K]    f32 uniform(0,1) noise
    w1_ref,     # [TV, H]    bf16 (fused-precision first matmul)
    b1_ref,     # [1, H]     f32
    wh_ref,     # [H, K+1]   f32 fused [scale | shape] head weights
    bh_ref,     # [1, K+1]   f32 fused [scale | shape] head bias
    wc_ref,     # [K, 2]     f32 classifier
    bc_ref,     # [1, 2]     f32
    theta_ref,  # out: [TB, K]
    prob_ref,   # out: [TB, 2]
    h_acc,      # scratch: [TB, H] f32 accumulator over the V contraction
):
    v = pl.program_id(1)

    @pl.when(v == 0)
    def _():
        h_acc[...] = jnp.zeros_like(h_acc)

    # Partial V-contraction: log1p(x) in f32, bf16 operands into the MXU,
    # f32 accumulation.
    x_bf16 = jnp.log1p(x_ref[...]).astype(jnp.bfloat16)
    h_acc[...] += jnp.dot(x_bf16, w1_ref[...], preferred_element_type=jnp.float32)

    @pl.when(v == pl.num_programs(1) - 1)
    def _():
        k = theta_ref.shape[1]

        # h = softplus(f1(log(1 + x)))
        h = _softplus(h_acc[...] + b1_ref[...])

        # Fused shape/scale heads: one [H, K+1] matmul, split by column.
        z = jnp.dot(h, wh_ref[...], preferred_element_type=jnp.float32) + bh_ref[...]
        z_scale = z[:, :k]                         # log Theta_scale, [TB, K]
        inv_shape = jnp.exp(-z[:, k:k + 1])        # 1 / Theta_shape,  [TB, 1]

        # Weibull reparameterization:
        #   Theta = Theta_scale * (-log(1 - e)) ** (1 / Theta_shape)
        #         = exp(z_scale + inv_shape * log(-log1p(-e)))
        e = e_ref[...]
        log_neg_log_1me = jnp.log(-jnp.log1p(-e))
        theta = jnp.exp(z_scale + inv_shape * log_neg_log_1me)
        theta_ref[...] = theta

        # Theta_norm = Theta / max(Theta, dim=1, keepdims) via EUP reciprocal.
        row_max = jnp.maximum(jnp.max(theta, axis=1, keepdims=True), 1e-30)
        theta_norm = theta * pl.reciprocal(row_max, approx=True)

        # prob = classifier(Theta_norm)
        prob_ref[...] = (
            jnp.dot(theta_norm, wc_ref[...], preferred_element_type=jnp.float32)
            + bc_ref[...]
        )


def pgbn_forward(params, x, theta_e, *, tile_b=None, v_tile=None):
    B, V = x.shape
    H = params["b1"].shape[1]
    K = params["w_cls"].shape[0]

    # --- tiling plan --------------------------------------------------------
    if tile_b is None:
        tile_b = min(512, _round_up(B, 8))          # f32 sublane = 8
    B_pad = _round_up(B, tile_b)

    if v_tile is None:
        v_tile = _round_up(V, 16) if V <= 2048 else 512   # 512 | 128, bf16-safe
    V_pad = _round_up(V, v_tile)

    # --- pad inputs / weights (zero vocab padding contributes nothing) ------
    x_p = jnp.pad(x, ((0, B_pad - B), (0, V_pad - V)))
    e_p = jnp.pad(theta_e, ((0, B_pad - B), (0, 0)), constant_values=0.5)
    w1_p = jnp.pad(params["w1"], ((0, V_pad - V), (0, 0)))

    grid = (B_pad // tile_b, V_pad // v_tile)

    # --- cost / VMEM hints --------------------------------------------------
    flops = 2 * B_pad * V_pad * H + 2 * B_pad * H * (K + 1) + 2 * B_pad * K * 2
    transcendentals = B_pad * (V_pad + 2 * H + 3 * K + 2)
    bytes_accessed = (
        x_p.size * 4 + e_p.size * 4 + w1_p.size * 2
        + (params["b1"].size + params["w_heads"].size + params["b_heads"].size
           + params["w_cls"].size + params["b_cls"].size) * 4
        + B_pad * K * 4 + B_pad * 2 * 4
    )
    vmem_est = (
        2 * (tile_b * v_tile * 4 + tile_b * K * 4)          # x, e (double-buffered)
        + 2 * (tile_b * K * 4 + tile_b * 2 * 4)             # outputs
        + 2 * (v_tile * H * 2)                              # bf16 w1 tiles
        + (H + H * (K + 1) + (K + 1) + K * 2 + 2) * 4       # resident weights/biases
        + tile_b * H * 4                                    # accumulator scratch
    )
    vmem_limit = int(min(64 << 20, max(2 * vmem_est + (4 << 20), 16 << 20)))

    out_shapes = (
        jax.ShapeDtypeStruct((B_pad, K), jnp.float32),
        jax.ShapeDtypeStruct((B_pad, 2), jnp.float32),
    )

    theta, prob = pl.pallas_call(
        pgbn_fwd_kernel,
        out_shape=out_shapes,
        grid_spec=pltpu.PrefetchScalarGridSpec(
            num_scalar_prefetch=0,
            grid=grid,
            in_specs=[
                pl.BlockSpec((tile_b, v_tile), lambda i, v: (i, v)),   # x
                pl.BlockSpec((tile_b, K), lambda i, v: (i, 0)),        # e
                pl.BlockSpec((v_tile, H), lambda i, v: (v, 0)),        # w1 (bf16)
                pl.BlockSpec((1, H), lambda i, v: (0, 0)),             # b1
                pl.BlockSpec((H, K + 1), lambda i, v: (0, 0)),         # w_heads
                pl.BlockSpec((1, K + 1), lambda i, v: (0, 0)),         # b_heads
                pl.BlockSpec((K, 2), lambda i, v: (0, 0)),             # w_cls
                pl.BlockSpec((1, 2), lambda i, v: (0, 0)),             # b_cls
            ],
            out_specs=(
                pl.BlockSpec((tile_b, K), lambda i, v: (i, 0)),
                pl.BlockSpec((tile_b, 2), lambda i, v: (i, 0)),
            ),
            scratch_shapes=[pltpu.VMEM((tile_b, H), jnp.float32)],
        ),
        compiler_params=pltpu.CompilerParams(
            dimension_semantics=("parallel", "arbitrary"),
            vmem_limit_bytes=vmem_limit,
        ),
        cost_estimate=pl.CostEstimate(
            flops=int(flops),
            transcendentals=int(transcendentals),
            bytes_accessed=int(bytes_accessed),
        ),
    )(
        x_p, e_p,
        w1_p, params["b1"],
        params["w_heads"], params["b_heads"],
        params["w_cls"], params["b_cls"],
    )
    return theta[:B], prob[:B]


def init_params(key, voc_size, hDim, numTopic):
    """Torch-Linear-like init; weights stored as [in, out]."""
    ks = jax.random.split(key, 8)

    def lin(kw, kb, fan_in, fan_out):
        bound = 1.0 / jnp.sqrt(fan_in)
        w = jax.random.uniform(kw, (fan_in, fan_out), jnp.float32, -bound, bound)
        b = jax.random.uniform(kb, (1, fan_out), jnp.float32, -bound, bound)
        return w, b

    w1, b1 = lin(ks[0], ks[1], voc_size, hDim)
    w_shape, b_shape = lin(ks[2], ks[3], hDim, 1)
    w_scale, b_scale = lin(ks[4], ks[5], hDim, numTopic)
    w_cls, b_cls = lin(ks[6], ks[7], numTopic, 2)

    # Fused / kernel-ready parameters:
    #   w1 in bf16 (first matmul operand), shape+scale heads concatenated as
    #   [scale columns | shape column] -> [H, K+1].
    return {
        "w1": w1.astype(jnp.bfloat16),
        "b1": b1,
        "w_heads": jnp.concatenate([w_scale, w_shape], axis=1),
        "b_heads": jnp.concatenate([b_scale, b_shape], axis=1),
        "w_cls": w_cls,
        "b_cls": b_cls,
    }


if __name__ == "__main__":
    # Small shapes consistent with the module's forward.
    B, VOC, HDIM, NTOPIC = 8, 32, 32, 16

    key = jax.random.PRNGKey(0)
    k_param, k_x, k_e = jax.random.split(key, 3)

    params = init_params(k_param, VOC, HDIM, NTOPIC)

    # x is a non-negative count-like input (bag-of-words style), as log(1+x) implies.
    x = jax.random.uniform(k_x, (B, VOC), jnp.float32, 0.0, 5.0)
    # Uniform(0,1) noise for the Weibull reparameterization (torch .uniform_(0,1)).
    theta_e = jax.random.uniform(k_e, (B, NTOPIC), jnp.float32, 0.0, 1.0)
    theta_e = jnp.clip(theta_e, 1e-6, 1.0 - 1e-6)

    theta, prob = pgbn_forward(params, x, theta_e)
    jax.block_until_ready((theta, prob))

    assert theta.shape == (B, NTOPIC) and prob.shape == (B, 2)
    assert bool(jnp.all(jnp.isfinite(theta))) and bool(jnp.all(jnp.isfinite(prob)))
    assert bool(jnp.all(theta > 0.0))

    # TODO(synk): updatePhi uses PGBN_sampler (CPU Gibbs/multinomial sampler with
    # data-dependent loops) — not part of forward(), no Pallas equivalent attempted.
    print("KERNEL_OK")
</pallas_src>

<mosaic_0001>
module attributes {stable_mosaic.version = 11 : i64} {
  func.func @pgbn_fwd_kernel(%arg0: i32, %arg1: i32, %arg2: memref<8x32xf32, #tpu.memory_space<vmem>>, %arg3: memref<8x16xf32, #tpu.memory_space<vmem>>, %arg4: memref<32x32xbf16, #tpu.memory_space<vmem>>, %arg5: memref<1x32xf32, #tpu.memory_space<vmem>>, %arg6: memref<32x17xf32, #tpu.memory_space<vmem>>, %arg7: memref<1x17xf32, #tpu.memory_space<vmem>>, %arg8: memref<16x2xf32, #tpu.memory_space<vmem>>, %arg9: memref<1x2xf32, #tpu.memory_space<vmem>>, %arg10: memref<8x16xf32, #tpu.memory_space<vmem>>, %arg11: memref<8x2xf32, #tpu.memory_space<vmem>>, %arg12: memref<8x32xf32, #tpu.memory_space<vmem>>) attributes {dimension_semantics = [#tpu.dimension_semantics<parallel>, #tpu.dimension_semantics<arbitrary>], iteration_bounds = array<i64: 1, 1>, scalar_prefetch = 0 : i64, scratch_operands = 1 : i64, tpu.core_type = #tpu.core_type<tc>, window_params = [{transform_indices = @transform_0, window_bounds = array<i64: 8, 32>}, {transform_indices = @transform_1, window_bounds = array<i64: 8, 16>}, {transform_indices = @transform_2, window_bounds = array<i64: 32, 32>}, {pipeline_mode = #tpu.pipeline_mode<synchronous>, transform_indices = @transform_3, window_bounds = array<i64: 1, 32>}, {pipeline_mode = #tpu.pipeline_mode<synchronous>, transform_indices = @transform_4, window_bounds = array<i64: 32, 17>}, {pipeline_mode = #tpu.pipeline_mode<synchronous>, transform_indices = @transform_5, window_bounds = array<i64: 1, 17>}, {pipeline_mode = #tpu.pipeline_mode<synchronous>, transform_indices = @transform_6, window_bounds = array<i64: 16, 2>}, {pipeline_mode = #tpu.pipeline_mode<synchronous>, transform_indices = @transform_7, window_bounds = array<i64: 1, 2>}, {transform_indices = @transform_8, window_bounds = array<i64: 8, 16>}, {transform_indices = @transform_9, window_bounds = array<i64: 8, 2>}]} {
    %c0_i32 = arith.constant 0 : i32
    %0 = arith.cmpi eq, %arg1, %c0_i32 : i32
    %1 = arith.extui %0 : i1 to i32
    %c0_i32_0 = arith.constant 0 : i32
    %2 = arith.cmpi ne, %1, %c0_i32_0 : i32
    scf.if %2 {
      %cst_10 = arith.constant 0.000000e+00 : f32
      %14 = vector.broadcast %cst_10 : f32 to vector<8x32xf32>
      %c0_11 = arith.constant 0 : index
      %c0_12 = arith.constant 0 : index
      %15 = vector.load %arg12[%c0_11, %c0_12] : memref<8x32xf32, #tpu.memory_space<vmem>>, vector<8x32xf32>
      tpu.vector_store %arg12[%c0_11, %c0_12], %14 {strides = array<i32>} : memref<8x32xf32, #tpu.memory_space<vmem>>, vector<8x32xf32>,
    } else {
    }
    %c0 = arith.constant 0 : index
    %c0_1 = arith.constant 0 : index
    %3 = vector.load %arg2[%c0, %c0_1] : memref<8x32xf32, #tpu.memory_space<vmem>>, vector<8x32xf32>
    %4 = math.log1p %3 : vector<8x32xf32>
    %5 = arith.truncf %4 : vector<8x32xf32> to vector<8x32xbf16>
    %c0_2 = arith.constant 0 : index
    %c0_3 = arith.constant 0 : index
    %6 = vector.load %arg12[%c0_2, %c0_3] : memref<8x32xf32, #tpu.memory_space<vmem>>, vector<8x32xf32>
    %c0_4 = arith.constant 0 : index
    %c0_5 = arith.constant 0 : index
    %7 = vector.load %arg4[%c0_4, %c0_5] : memref<32x32xbf16, #tpu.memory_space<vmem>>, vector<32x32xbf16>
    %cst = arith.constant dense<0.000000e+00> : vector<8x32xf32>
    %8 = tpu.matmul %5, %7, %cst {dimension_numbers = #tpu.dot_dimension_numbers<[1], [0], [0], [1], [0, 0, 1, 1], [], []>} : vector<8x32xbf16>, vector<32x32xbf16>, vector<8x32xf32> -> vector<8x32xf32>
    %9 = arith.addf %6, %8 : vector<8x32xf32>
    %c0_6 = arith.constant 0 : index
    %c0_7 = arith.constant 0 : index
    %10 = vector.load %arg12[%c0_6, %c0_7] : memref<8x32xf32, #tpu.memory_space<vmem>>, vector<8x32xf32>
    tpu.vector_store %arg12[%c0_6, %c0_7], %9 {strides = array<i32>} : memref<8x32xf32, #tpu.memory_space<vmem>>, vector<8x32xf32>,
    %c0_i32_8 = arith.constant 0 : i32
    %11 = arith.cmpi eq, %arg1, %c0_i32_8 : i32
    %12 = arith.extui %11 : i1 to i32
    %c0_i32_9 = arith.constant 0 : i32
    %13 = arith.cmpi ne, %12, %c0_i32_9 : i32
    scf.if %13 {
      %c0_10 = arith.constant 0 : index
      %c0_11 = arith.constant 0 : index
      %14 = vector.load %arg12[%c0_10, %c0_11] : memref<8x32xf32, #tpu.memory_space<vmem>>, vector<8x32xf32>
      %c0_12 = arith.constant 0 : index
      %c0_13 = arith.constant 0 : index
      %15 = vector.load %arg5[%c0_12, %c0_13] : memref<1x32xf32, #tpu.memory_space<vmem>>, vector<1x32xf32>
      %16 = vector.broadcast %15 : vector<1x32xf32> to vector<8x32xf32>
      %17 = arith.addf %14, %16 : vector<8x32xf32>
      %18 = math.absf %17 : vector<8x32xf32>
      %cst_14 = arith.constant 0.000000e+00 : f32
      %19 = vector.broadcast %cst_14 : f32 to vector<8x32xf32>
      %20 = arith.subf %19, %18 : vector<8x32xf32>
      %21 = math.exp %20 : vector<8x32xf32>
      %22 = math.log1p %21 : vector<8x32xf32>
      %cst_15 = arith.constant 0.000000e+00 : f32
      %23 = vector.broadcast %cst_15 : f32 to vector<8x32xf32>
      %24 = arith.maximumf %17, %23 : vector<8x32xf32>
      %25 = arith.addf %22, %24 : vector<8x32xf32>
      %c0_16 = arith.constant 0 : index
      %c0_17 = arith.constant 0 : index
      %26 = vector.load %arg6[%c0_16, %c0_17] : memref<32x17xf32, #tpu.memory_space<vmem>>, vector<32x17xf32>
      %cst_18 = arith.constant dense<0.000000e+00> : vector<8x17xf32>
      %27 = tpu.matmul %25, %26, %cst_18 {dimension_numbers = #tpu.dot_dimension_numbers<[1], [0], [0], [1], [0, 0, 1, 1], [], []>} : vector<8x32xf32>, vector<32x17xf32>, vector<8x17xf32> -> vector<8x17xf32>
      %c0_19 = arith.constant 0 : index
      %c0_20 = arith.constant 0 : index
      %28 = vector.load %arg7[%c0_19, %c0_20] : memref<1x17xf32, #tpu.memory_space<vmem>>, vector<1x17xf32>
      %29 = vector.broadcast %28 : vector<1x17xf32> to vector<8x17xf32>
      %30 = arith.addf %27, %29 : vector<8x17xf32>
      %31 = vector.extract_strided_slice %30 {offsets = [0, 0], sizes = [8, 16], strides = [1, 1]} : vector<8x17xf32> to vector<8x16xf32>
      %32 = vector.extract_strided_slice %30 {offsets = [0, 16], sizes = [8, 1], strides = [1, 1]} : vector<8x17xf32> to vector<8x1xf32>
      %cst_21 = arith.constant 0.000000e+00 : f32
      %33 = vector.broadcast %cst_21 : f32 to vector<8x1xf32>
      %34 = arith.subf %33, %32 : vector<8x1xf32>
      %35 = math.exp %34 : vector<8x1xf32>
      %c0_22 = arith.constant 0 : index
      %c0_23 = arith.constant 0 : index
      %36 = vector.load %arg3[%c0_22, %c0_23] : memref<8x16xf32, #tpu.memory_space<vmem>>, vector<8x16xf32>
      %cst_24 = arith.constant 0.000000e+00 : f32
      %37 = vector.broadcast %cst_24 : f32 to vector<8x16xf32>
      %38 = arith.subf %37, %36 : vector<8x16xf32>
      %39 = math.log1p %38 : vector<8x16xf32>
      %cst_25 = arith.constant 0.000000e+00 : f32
      %40 = vector.broadcast %cst_25 : f32 to vector<8x16xf32>
      %41 = arith.subf %40, %39 : vector<8x16xf32>
      %42 = math.log %41 : vector<8x16xf32>
      %43 = vector.broadcast %35 : vector<8x1xf32> to vector<8x16xf32>
      %44 = arith.mulf %43, %42 : vector<8x16xf32>
      %45 = arith.addf %31, %44 : vector<8x16xf32>
      %46 = math.exp %45 : vector<8x16xf32>
      %c0_26 = arith.constant 0 : index
      %c0_27 = arith.constant 0 : index
      %47 = vector.load %arg10[%c0_26, %c0_27] : memref<8x16xf32, #tpu.memory_space<vmem>>, vector<8x16xf32>
      tpu.vector_store %arg10[%c0_26, %c0_27], %46 {strides = array<i32>} : memref<8x16xf32, #tpu.memory_space<vmem>>, vector<8x16xf32>,
      %cst_28 = arith.constant dense<0xFF800000> : vector<8xf32>
      %48 = vector.multi_reduction <maximumf>, %46, %cst_28 [1] : vector<8x16xf32> to vector<8xf32>
      %49 = vector.shape_cast %48 : vector<8xf32> to vector<8x1xf32>
      %cst_29 = arith.constant 1.000000e-30 : f32
      %50 = vector.broadcast %cst_29 : f32 to vector<8x1xf32>
      %51 = arith.maximumf %49, %50 : vector<8x1xf32>
      %52 = tpu.reciprocal %51 {approx = true} : vector<8x1xf32> -> vector<8x1xf32>
      %53 = vector.broadcast %52 : vector<8x1xf32> to vector<8x16xf32>
      %54 = arith.mulf %46, %53 : vector<8x16xf32>
      %c0_30 = arith.constant 0 : index
      %c0_31 = arith.constant 0 : index
      %55 = vector.load %arg8[%c0_30, %c0_31] : memref<16x2xf32, #tpu.memory_space<vmem>>, vector<16x2xf32>
      %cst_32 = arith.constant dense<0.000000e+00> : vector<8x2xf32>
      %56 = tpu.matmul %54, %55, %cst_32 {dimension_numbers = #tpu.dot_dimension_numbers<[1], [0], [0], [1], [0, 0, 1, 1], [], []>} : vector<8x16xf32>, vector<16x2xf32>, vector<8x2xf32> -> vector<8x2xf32>
      %c0_33 = arith.constant 0 : index
      %c0_34 = arith.constant 0 : index
      %57 = vector.load %arg9[%c0_33, %c0_34] : memref<1x2xf32, #tpu.memory_space<vmem>>, vector<1x2xf32>
      %58 = vector.broadcast %57 : vector<1x2xf32> to vector<8x2xf32>
      %59 = arith.addf %56, %58 : vector<8x2xf32>
      %c0_35 = arith.constant 0 : index
      %c0_36 = arith.constant 0 : index
      %60 = vector.load %arg11[%c0_35, %c0_36] : memref<8x2xf32, #tpu.memory_space<vmem>>, vector<8x2xf32>
      tpu.vector_store %arg11[%c0_35, %c0_36], %59 {strides = array<i32>} : memref<8x2xf32, #tpu.memory_space<vmem>>, vector<8x2xf32>,
    } else {
    }
    return
  }
  func.func @transform_0(%arg0: i32, %arg1: i32) -> (i32, i32) {
    %c0_i32 = arith.constant 0 : i32
    return %arg0, %arg1 : i32, i32
  }
  func.func @transform_1(%arg0: i32, %arg1: i32) -> (i32, i32) {
    %c0_i32 = arith.constant 0 : i32
    %c0_i32_0 = arith.constant 0 : i32
    return %arg0, %c0_i32 : i32, i32
  }
  func.func @transform_2(%arg0: i32, %arg1: i32) -> (i32, i32) {
    %c0_i32 = arith.constant 0 : i32
    %c0_i32_0 = arith.constant 0 : i32
    return %arg1, %c0_i32 : i32, i32
  }
  func.func @transform_3(%arg0: i32, %arg1: i32) -> (i32, i32) {
    %c0_i32 = arith.constant 0 : i32
    %c0_i32_0 = arith.constant 0 : i32
    %c0_i32_1 = arith.constant 0 : i32
    return %c0_i32, %c0_i32_0 : i32, i32
  }
  func.func @transform_4(%arg0: i32, %arg1: i32) -> (i32, i32) {
    %c0_i32 = arith.constant 0 : i32
    %c0_i32_0 = arith.constant 0 : i32
    %c0_i32_1 = arith.constant 0 : i32
    return %c0_i32, %c0_i32_0 : i32, i32
  }
  func.func @transform_5(%arg0: i32, %arg1: i32) -> (i32, i32) {
    %c0_i32 = arith.constant 0 : i32
    %c0_i32_0 = arith.constant 0 : i32
    %c0_i32_1 = arith.constant 0 : i32
    return %c0_i32, %c0_i32_0 : i32, i32
  }
  func.func @transform_6(%arg0: i32, %arg1: i32) -> (i32, i32) {
    %c0_i32 = arith.constant 0 : i32
    %c0_i32_0 = arith.constant 0 : i32
    %c0_i32_1 = arith.constant 0 : i32
    return %c0_i32, %c0_i32_0 : i32, i32
  }
  func.func @transform_7(%arg0: i32, %arg1: i32) -> (i32, i32) {
    %c0_i32 = arith.constant 0 : i32
    %c0_i32_0 = arith.constant 0 : i32
    %c0_i32_1 = arith.constant 0 : i32
    return %c0_i32, %c0_i32_0 : i32, i32
  }
  func.func @transform_8(%arg0: i32, %arg1: i32) -> (i32, i32) {
    %c0_i32 = arith.constant 0 : i32
    %c0_i32_0 = arith.constant 0 : i32
    return %arg0, %c0_i32 : i32, i32
  }
  func.func @transform_9(%arg0: i32, %arg1: i32) -> (i32, i32) {
    %c0_i32 = arith.constant 0 : i32
    %c0_i32_0 = arith.constant 0 : i32
    return %arg0, %c0_i32 : i32, i32
  }
}

</mosaic_0001>

<bundles_post_ra>
// kernel: tpu_custom_call.1
= control target key start
LH: loop header
LB: loop body
LE: loop exit
PB: predicated region body
PF: predicated region fallthrough
CT: control target
= control target key end

     0   :  { %vm37_vm0 = vcmask 261120   ;;  %v288_v3 = vmov 0.0   ;;  %s390_s0 = inlined_call_operand.vmem [shape: f32[8,32], index: 0, kind: input, shape index: {}]   ;;  %s391_s1 = inlined_call_operand.vmem [shape: f32[8,16], index: 1, kind: input, shape index: {}]   ;;  %s392_s2 = inlined_call_operand.vmem [shape: bf16[32,32], index: 2, kind: input, shape index: {}]   ;;  %s393_s3 = inlined_call_operand.vmem [shape: f32[1,32], index: 3, kind: input, shape index: {}]   ;;  %s394_s4 = inlined_call_operand.vmem [shape: f32[32,17], index: 4, kind: input, shape index: {}]   ;;  %s395_s5 = inlined_call_operand.vmem [shape: f32[1,17], index: 5, kind: input, shape index: {}]   ;;  %s396_s6 = inlined_call_operand.vmem [shape: f32[16,2], index: 6, kind: input, shape index: {}]   ;;  %s397_s7 = inlined_call_operand.vmem [shape: f32[1,2], index: 7, kind: input, shape index: {}]   ;;  %s398_s8 = inlined_call_operand.hbm [shape: f32[8,16], index: 8, kind: output, shape index: {0}]   ;;  %s399_s9 = inlined_call_operand.vmem [shape: f32[8,2], index: 9, kind: output, shape index: {1}]  }
   0x1   :  { %v238_v0 = vld [vmem:[%s392_s2 + $0x8] sm:$0xff]  ;;  %v39_v1 = vld [vmem:[%s390_s0] sm:$0xff]  ;;  %38 = vst.msk [vmem:[#allocation2] sm:$0xff] %vm37_vm0, %v288_v3 }
   0x2   :  { %v237_v2 = vld [vmem:[%s392_s2] sm:$0xff]  ;;  %v40_v4 = vadd.f32 1.0, %v39_v1  ;;  %v43_v5 = vmul.f32 -0.5, %v39_v1  ;;  %77 = vmatpush.bf16.msra.mxu0 %v238_v0 }
   0x4   :  { %246 = vlog2.f32 %v40_v4 }
   0x5   :  { %15 = vsyncpa [#allocation4], 0  ;;  %v44_v6 = vadd.f32 1.0, %v43_v5  ;;  %v46_v7 = vand.u32 2147483647, %v39_v1  ;;  %v113_v13 = vld [vmem:[%s394_s4 + $0x18] sm:$0xff] }
   0x6   :  { %78 = vmatpush.bf16.msra.mxu0 %v237_v2  ;;  %v112_v14 = vld [vmem:[%s394_s4 + $0x10] sm:$0xff]  ;;  %133 = vmatpush.msra.mxu1 %v113_v13  ;;  %v111_v15 = vld [vmem:[%s394_s4 + $0x8] sm:$0xff]  ;;  %v110_v16 = vld [vmem:[%s394_s4] sm:$0xff]  ;;  %v289_v38 = vmov 16   ;;  %vm167_vm4 = vcmask 130048   ;;  %s290_s27 = smov [#allocation3]  }
   0x7   :  { %v45_v8 = vmul.f32 %v44_v6, %v39_v1  ;;  %vm47_vm1 = vcmp.lt.f32.partialorder %v46_v7, 0.0004427343  ;;  %v243_v20 = vld [vmem:[%s393_s3] ss:$0 sm:$0xff]  ;;  %242 = vset.pattern.permute.xlu0 %v289_v38  ;;  %v176_v0 = vld [vmem:[%s396_s6 + $0x8] sm:$0xff]  ;;  %s211_s28 = sshll.u32 %s290_s27, 4  ;;  %s212_s28 = int_to_ptr.vmem [resolvable:$true] %s211_s28 }
   0x8   :  { %134 = vmatpush.msra.mxu1 %v112_v14  ;;  %v50_v17 = vld [vmem:[#allocation2] sm:$0xff]  ;;  %198 = vmatpush.msra.mxu2 %v176_v0  ;;  %s213_s10 = sshll.u32 %s398_s8, 4  ;;  %vm204_vm5 = vcmask 15360   ;;  %s214_s10 = int_to_ptr.hbm [resolvable:$true] %s213_s10 }
   0x9   :  { %v244_v39 = vld [vmem:[%s395_s5] ss:$0 sm:$0xff] }
   0xa   :  { %v247_v9 = vpop.eup %246  ;;  %135 = vmatpush.msra.mxu1 %v111_v15  ;;  %v144_v45 = vld [vmem:[%s391_s1] sm:$0xff] }
   0xb   :  { %v42_v10 = vmul.f32 0.6931472, %v247_v9  ;;  %v145_v46 = vsub.f32 0.0, %v144_v45  ;;  %v175_v1 = vld [vmem:[%s396_s6] sm:$0xff] }
   0xc   :  { %136 = vmatpush.msra.mxu1 %v110_v16  ;;  %199 = vmatpush.msra.mxu2 %v175_v1  ;;  %v245_v6 = vld [vmem:[%s397_s7] ss:$0 sm:$0xff] }
   0xd   :  { %v48_v11 = vsel %vm47_vm1, %v45_v8, %v42_v10  ;;  %v146_v47 = vadd.f32 1.0, %v145_v46  ;;  %v149_v48 = vmul.f32 -0.5, %v145_v46  ;;  %v152_v51 = vand.u32 2147483647, %v145_v46 }
   0xe   :  { %v49_v12 = vpack.c.bf16 %v48_v11, %v48_v11 }
   0xf   :  { %v150_v49 = vadd.f32 1.0, %v149_v48  ;;  %vm153_vm3 = vcmp.lt.f32.partialorder %v152_v51, 0.0004427343 }
  0x10   :  { %234 = vmatmul.msk.bf16.vlgmr.msra.gmra.mxu0 %vm37_vm0, %v49_v12 }
  0x11   :  { %v151_v53 = vmul.f32 %v150_v49, %v145_v46 }
  0x8d   :  { %v80_v18 = vpop.f32.mrf.mxu0 }
  0x8e   :  { %v84_v19 = vadd.f32 %v80_v18, %v50_v17 }
  0x90   :  { %85 = vst.msk [vmem:[#allocation2] sm:$0xff] %vm37_vm0, %v84_v19 }
  0x95   :  { %v82_v21 = vpop.f32.mrf.mxu0 }
  0x97   :  { %v89_v22 = vld [vmem:[#allocation2] sm:$0xff] }
  0x98   :  { %v94_v23 = vadd.f32 %v243_v20, %v89_v22 }
  0x9a   :  { %v95_v24 = vand.u32 2147483647, %v94_v23  ;;  %v108_v35 = vmax.f32 %v94_v23, 0.0 }
  0x9c   :  { %v96_v25 = vsub.f32 0.0, %v95_v24 }
  0x9e   :  { %v97_v26 = vmul.f32 1.442695, %v96_v25 }
  0xa0   :  { %248 = vpow2.f32 %v97_v26 }
  0xa6   :  { %v249_v27 = vpop.eup %248 }
  0xa7   :  { %v99_v28 = vadd.f32 1.0, %v249_v27  ;;  %v102_v29 = vmul.f32 -0.5, %v249_v27  ;;  %v105_v31 = vand.u32 2147483647, %v249_v27 }
  0xa9   :  { %250 = vlog2.f32 %v99_v28  ;;  %v103_v30 = vadd.f32 1.0, %v102_v29  ;;  %vm106_vm2 = vcmp.lt.f32.partialorder %v105_v31, 0.0004427343 }
  0xab   :  { %v104_v34 = vmul.f32 %v249_v27, %v103_v30 }
  0xaf   :  { %v251_v32 = vpop.eup %250 }
  0xb0   :  { %v101_v33 = vmul.f32 0.6931472, %v251_v32 }
  0xb2   :  { %v107_v36 = vsel %vm106_vm2, %v104_v34, %v101_v33 }
  0xb3   :  { %v109_v37 = vadd.f32 %v108_v35, %v107_v36 }
  0xb5   :  { %235 = vmatmul.msk.f32.vlgmr.msra.gmra.mxu1 %vm37_vm0, %v109_v37 }
 0x132   :  { %v138_v40 = vpop.f32.mrf.mxu1 }
 0x133   :  { %v139_v41 = vadd.f32 %v244_v39, %v138_v40 }
 0x135   :  { %v141_v42 = vsub.f32 0.0, %v139_v41 }
 0x137   :  { %v142_v43 = vmul.f32 1.442695, %v141_v42 }
 0x139   :  { %252 = vpow2.f32 %v142_v43 }
 0x13a   :  { %254 = vlog2.f32 %v146_v47 }
 0x13f   :  { %v253_v44 = vpop.eup %252 }
 0x140   :  { %160 = vperm.xlu0 %242, %v253_v44   ;;  %v255_v50 = vpop.eup %254 }
 0x141   :  { %v148_v52 = vmul.f32 0.6931472, %v255_v50 }
 0x143   :  { %v154_v54 = vsel %vm153_vm3, %v151_v53, %v148_v52 }
 0x144   :  { %v155_v55 = vsub.f32 0.0, %v154_v54 }
 0x146   :  { %256 = vlog2.f32 %v155_v55 }
 0x14c   :  { %v257_v56 = vpop.eup %256 }
 0x14d   :  { %v157_v57 = vmul.f32 0.6931472, %v257_v56 }
 0x1b2   :  { %v161_v58 = vpop.permute.xlu0 %160 }
 0x1b3   :  { %v163_v59 = vmul.f32 %v161_v58, %v157_v57 }
 0x1b5   :  { %v164_v60 = vadd.f32 %v163_v59, %v139_v41 }
 0x1b7   :  { %v165_v61 = vmul.f32 1.442695, %v164_v60 }
 0x1b9   :  { %258 = vpow2.f32 %v165_v61 }
 0x1bf   :  { %v259_v62 = vpop.eup %258 }
 0x1c0   :  { %v169_v63 = vsel %vm167_vm4, %v259_v62, -inf  ;;  %168 = vst.msk [vmem:[#allocation3] sm:$0xff] %vm167_vm4, %v259_v62 }
 0x1c1   :  { %170 = vmax.xlane.f32.xlu0 %v169_v63  ;;  %216 = dma.vmem_to_hbm [thread:$0]  %s212_s28, 128, %s214_s10, [#allocation4]  }
 0x234   :  { %v171_v2 = vpop.xlane.xlu0 %170 }
 0x235   :  { %v172_v3 = vmax.f32 %v171_v2, 1e-30 }
 0x237   :  { %260 = vrcp.f32 %v172_v3 }
 0x23d   :  { %v261_v4 = vpop.eup %260 }
 0x23e   :  { %v174_v5 = vmul.f32 %v261_v4, %v259_v62 }
 0x240   :  { %236 = vmatmul.msk.f32.vlgmr.msra.gmra.mxu2 %vm167_vm4, %v174_v5 }
 0x2c3   :  { %v201_v7 = vpop.f32.mrf.mxu2 }
 0x2c4   :  { %v202_v8 = vadd.f32 %v245_v6, %v201_v7 }
 0x2c6   :  { %205 = vst.msk [vmem:[%s399_s9] sm:$0xff] %vm204_vm5, %v202_v8 }
 0x2c7   :  { %286 = dma.done.wait [#allocation4], 128  }
 0x2c8   :  { %287 = vsyncadd [#allocation4], 4294967168 }
 0x2c9   :  { %225 = vsyncpa [#allocation4], 1 }

</bundles_post_ra>
